<compile_context>
chip_gen: v6e
topology: v6e:2x2x1
jax: 0.10.0
libtpu: 0.0.40
codegen_flags: <defaults>
</compile_context>

<pallas_src>
import jax
import jax.numpy as jnp
from jax import lax
from jax.experimental import pallas as pl
from jax.experimental.pallas import tpu as pltpu

_SUBLANES = 8


def _make_ce_kernel(block_b, n_rows, steps_per_split, needs_mask):
    def _ce_kernel(x_ref, t_ref, out_ref, acc_ref):
        i = pl.program_id(1)

        @pl.when(i == 0)
        def _init():
            acc_ref[...] = jnp.zeros_like(acc_ref)

        eps = 1e-8
        x = jnp.clip(x_ref[...].astype(jnp.float32), eps, 1.0 - eps)
        prod = t_ref[...].astype(jnp.float32) * jnp.log(x)

        if needs_mask:
            # Rows at/after n_rows (partial tail block or a clamped duplicate
            # block from an uneven split) contribute exactly 0.  jnp.where is a
            # select, so garbage (even NaN) in the unloaded tail never leaks.
            row0 = (pl.program_id(0) * steps_per_split + i) * block_b
            rows = row0 + lax.broadcasted_iota(jnp.int32, (block_b, 1), 0)
            prod = jnp.where(rows < n_rows, prod, 0.0)

        # VALU-only partial reduce: splitting the leading (sublane-major) dim
        # of a (block_b, C) tile is layout-free; the cross-lane/sublane reduce
        # is deferred to the tiny wrapper finalize.
        acc_ref[...] += jnp.sum(prod.reshape(-1, _SUBLANES, prod.shape[-1]), axis=0)

        @pl.when(i == pl.num_programs(1) - 1)
        def _fin():
            out_ref[0] = acc_ref[...]

    return _ce_kernel


def _round_up(x, m):
    return ((x + m - 1) // m) * m


def _device_kind():
    try:
        return jax.devices()[0].device_kind.lower()
    except Exception:  # pragma: no cover - CPU/interpret fallbacks
        return ""


def one_hot_cross_entropy_loss(input_logits, target_one_hot, *, block_bytes=None):
    """input_logits, target_one_hot: same-shape (B, C[, ...]) arrays. Returns scalar f32 loss."""
    assert input_logits.shape == target_one_hot.shape
    assert input_logits.ndim >= 2

    orig_shape = input_logits.shape
    # mean over everything except dim=1 (which the sum removes):
    #   loss = -sum_all(t * log(clip(x))) / (numel / C)
    num_rows_for_mean = input_logits.size // orig_shape[1]

    x, t = input_logits, target_one_hot
    if x.ndim > 2:
        # Leading-dim merge keeps the minor (lane) dim -> cheap relayout.
        x = x.reshape(-1, orig_shape[-1])
        t = t.reshape(-1, orig_shape[-1])
    B, C = x.shape

    kind = _device_kind()
    if block_bytes is None:
        # Per-operand block budget (f32): bigger on v6e/v7x to amortize the
        # ~0.35us/step grid overhead; v5e steps are long enough already.
        block_bytes = 8 * 1024 * 1024 if ("v7" in kind or "v6" in kind) else 4 * 1024 * 1024

    # TODO(synk): for absurdly large C (single row > block budget) this would
    # need an extra lane-tiling grid axis over C; not needed for this module.
    block_b_cap = max(_SUBLANES, (block_bytes // (C * 4)) // _SUBLANES * _SUBLANES)
    block_b = min(block_b_cap, _round_up(B, _SUBLANES))
    steps_total = pl.cdiv(B, block_b)

    # Independent row ranges only where there are two TensorCores (v7x); on
    # single-core chips an extra "parallel" sweep is pure overhead.
    num_splits = 2 if ("v7" in kind and steps_total >= 2) else 1
    steps_per_split = pl.cdiv(steps_total, num_splits)

    needs_mask = (num_splits * steps_per_split * block_b) != B
    last_block = steps_total - 1

    def row_block(c, i):
        # Clamp so a trailing block from an uneven split never indexes past the
        # array; its (duplicated) contribution is masked to zero in-kernel.
        return (jnp.minimum(c * steps_per_split + i, last_block), 0)

    kernel = _make_ce_kernel(block_b, B, steps_per_split, needs_mask)

    x_bytes = block_b * C * jnp.dtype(x.dtype).itemsize
    t_bytes = block_b * C * jnp.dtype(t.dtype).itemsize
    live_bytes = 2 * (x_bytes + t_bytes) + 4 * _SUBLANES * C * 4  # dbl-buffered inputs + out/acc
    vmem_limit = min(100 * 1024 * 1024, max(32 * 1024 * 1024, int(live_bytes * 1.25)))

    partials = pl.pallas_call(
        kernel,
        out_shape=jax.ShapeDtypeStruct((num_splits, _SUBLANES, C), jnp.float32),
        grid_spec=pltpu.PrefetchScalarGridSpec(
            num_scalar_prefetch=0,
            grid=(num_splits, steps_per_split),
            in_specs=[
                pl.BlockSpec((block_b, C), row_block),
                pl.BlockSpec((block_b, C), row_block),
            ],
            # One resident (8, C) partial per split; written only at finalize.
            out_specs=pl.BlockSpec((1, _SUBLANES, C), lambda c, i: (c, 0, 0)),
            scratch_shapes=[pltpu.VMEM((_SUBLANES, C), jnp.float32)],
        ),
        compiler_params=pltpu.CompilerParams(
            # Outer split axis may be sharded across TensorCores (v7x); inner
            # reduction axis carries the resident accumulator -> "arbitrary".
            dimension_semantics=("parallel", "arbitrary"),
            vmem_limit_bytes=vmem_limit,
        ),
    )(x, t)

    # Tiny finalize: cross-lane reduce of (num_splits, 8, C) + the mean.
    return (-jnp.sum(partials) / jnp.float32(num_rows_for_mean)).astype(jnp.float32)


def _reference(input_logits, target_one_hot):
    eps = 1e-8
    x = jnp.clip(input_logits.astype(jnp.float32), eps, 1.0 - eps)
    lp = jnp.log(x)
    return jnp.mean(-jnp.sum(target_one_hot.astype(jnp.float32) * lp, axis=1))


if __name__ == "__main__":
    key = jax.random.PRNGKey(0)
    k1, k2, k3, k4, k5, k6 = jax.random.split(key, 6)

    # Small shapes consistent with the module: batch=16, classes=32.
    B, C = 16, 32
    logits = jax.nn.softmax(jax.random.normal(k1, (B, C), jnp.float32), axis=1)
    labels = jax.random.randint(k2, (B,), 0, C)
    one_hot = jax.nn.one_hot(labels, C, dtype=jnp.float32)
    loss = jax.block_until_ready(one_hot_cross_entropy_loss(logits, one_hot))
    ref = _reference(logits, one_hot)
    assert jnp.allclose(loss, ref, rtol=1e-5, atol=1e-6), (loss, ref)

    # Ragged shape (no multiple-of-8/128 structure) to exercise the in-kernel mask.
    B2, C2 = 7, 33
    logits2 = jax.nn.softmax(jax.random.normal(k3, (B2, C2), jnp.float32), axis=1)
    labels2 = jax.random.randint(k4, (B2,), 0, C2)
    one_hot2 = jax.nn.one_hot(labels2, C2, dtype=jnp.float32)
    loss2 = jax.block_until_ready(one_hot_cross_entropy_loss(logits2, one_hot2))
    ref2 = _reference(logits2, one_hot2)
    assert jnp.allclose(loss2, ref2, rtol=1e-5, atol=1e-6), (loss2, ref2)

    # Multi-step accumulation path (tiny forced block size -> many grid steps + tail mask).
    B3, C3 = 61, 40
    logits3 = jax.nn.softmax(jax.random.normal(k5, (B3, C3), jnp.float32), axis=1)
    labels3 = jax.random.randint(k6, (B3,), 0, C3)
    one_hot3 = jax.nn.one_hot(labels3, C3, dtype=jnp.float32)
    loss3 = jax.block_until_ready(
        one_hot_cross_entropy_loss(logits3, one_hot3, block_bytes=_SUBLANES * C3 * 4))
    ref3 = _reference(logits3, one_hot3)
    assert jnp.allclose(loss3, ref3, rtol=1e-5, atol=1e-6), (loss3, ref3)

    print("KERNEL_OK")
</pallas_src>

<mosaic_0001>
module attributes {stable_mosaic.version = 11 : i64} {
  func.func @_ce_kernel(%arg0: i32, %arg1: i32, %arg2: memref<16x32xf32, #tpu.memory_space<vmem>>, %arg3: memref<16x32xf32, #tpu.memory_space<vmem>>, %arg4: memref<1x8x32xf32, #tpu.memory_space<vmem>>, %arg5: memref<8x32xf32, #tpu.memory_space<vmem>>) attributes {dimension_semantics = [#tpu.dimension_semantics<parallel>, #tpu.dimension_semantics<arbitrary>], iteration_bounds = array<i64: 1, 1>, scalar_prefetch = 0 : i64, scratch_operands = 1 : i64, tpu.core_type = #tpu.core_type<tc>, window_params = [{transform_indices = @transform_0, window_bounds = array<i64: 16, 32>}, {transform_indices = @transform_1, window_bounds = array<i64: 16, 32>}, {transform_indices = @transform_2, window_bounds = array<i64: 1, 8, 32>}]} {
    %c0_i32 = arith.constant 0 : i32
    %0 = arith.cmpi eq, %arg1, %c0_i32 : i32
    %1 = arith.extui %0 : i1 to i32
    %c0_i32_0 = arith.constant 0 : i32
    %2 = arith.cmpi ne, %1, %c0_i32_0 : i32
    scf.if %2 {
      %cst_12 = arith.constant 0.000000e+00 : f32
      %19 = vector.broadcast %cst_12 : f32 to vector<8x32xf32>
      %c0_13 = arith.constant 0 : index
      %c0_14 = arith.constant 0 : index
      %20 = vector.load %arg5[%c0_13, %c0_14] : memref<8x32xf32, #tpu.memory_space<vmem>>, vector<8x32xf32>
      tpu.vector_store %arg5[%c0_13, %c0_14], %19 {strides = array<i32>} : memref<8x32xf32, #tpu.memory_space<vmem>>, vector<8x32xf32>,
    } else {
    }
    %c0 = arith.constant 0 : index
    %c0_1 = arith.constant 0 : index
    %3 = vector.load %arg2[%c0, %c0_1] : memref<16x32xf32, #tpu.memory_space<vmem>>, vector<16x32xf32>
    %cst = arith.constant 9.99999993E-9 : f32
    %cst_2 = arith.constant 1.000000e+00 : f32
    %4 = vector.broadcast %cst : f32 to vector<16x32xf32>
    %5 = arith.maximumf %4, %3 : vector<16x32xf32>
    %6 = vector.broadcast %cst_2 : f32 to vector<16x32xf32>
    %7 = arith.minimumf %6, %5 : vector<16x32xf32>
    %c0_3 = arith.constant 0 : index
    %c0_4 = arith.constant 0 : index
    %8 = vector.load %arg3[%c0_3, %c0_4] : memref<16x32xf32, #tpu.memory_space<vmem>>, vector<16x32xf32>
    %9 = math.log %7 : vector<16x32xf32>
    %10 = arith.mulf %8, %9 : vector<16x32xf32>
    %c0_5 = arith.constant 0 : index
    %c0_6 = arith.constant 0 : index
    %11 = vector.load %arg5[%c0_5, %c0_6] : memref<8x32xf32, #tpu.memory_space<vmem>>, vector<8x32xf32>
    %12 = vector.shape_cast %10 : vector<16x32xf32> to vector<2x8x32xf32>
    %cst_7 = arith.constant dense<0.000000e+00> : vector<8x32xf32>
    %13 = vector.multi_reduction <add>, %12, %cst_7 [0] : vector<2x8x32xf32> to vector<8x32xf32>
    %14 = arith.addf %11, %13 : vector<8x32xf32>
    %c0_8 = arith.constant 0 : index
    %c0_9 = arith.constant 0 : index
    %15 = vector.load %arg5[%c0_8, %c0_9] : memref<8x32xf32, #tpu.memory_space<vmem>>, vector<8x32xf32>
    tpu.vector_store %arg5[%c0_8, %c0_9], %14 {strides = array<i32>} : memref<8x32xf32, #tpu.memory_space<vmem>>, vector<8x32xf32>,
    %c0_i32_10 = arith.constant 0 : i32
    %16 = arith.cmpi eq, %arg1, %c0_i32_10 : i32
    %17 = arith.extui %16 : i1 to i32
    %c0_i32_11 = arith.constant 0 : i32
    %18 = arith.cmpi ne, %17, %c0_i32_11 : i32
    scf.if %18 {
      %c0_12 = arith.constant 0 : index
      %c0_13 = arith.constant 0 : index
      %19 = vector.load %arg5[%c0_12, %c0_13] : memref<8x32xf32, #tpu.memory_space<vmem>>, vector<8x32xf32>
      %c0_14 = arith.constant 0 : index
      %c0_15 = arith.constant 0 : index
      %c0_16 = arith.constant 0 : index
      %20 = vector.load %arg4[%c0_14, %c0_15, %c0_16] : memref<1x8x32xf32, #tpu.memory_space<vmem>>, vector<1x8x32xf32>
      %21 = vector.shape_cast %20 : vector<1x8x32xf32> to vector<8x32xf32>
      %22 = vector.shape_cast %19 : vector<8x32xf32> to vector<1x8x32xf32>
      tpu.vector_store %arg4[%c0_14, %c0_15, %c0_16], %22 {strides = array<i32>} : memref<1x8x32xf32, #tpu.memory_space<vmem>>, vector<1x8x32xf32>,
    } else {
    }
    return
  }
  func.func @transform_0(%arg0: i32, %arg1: i32) -> (i32, i32) {
    %c1_i32 = arith.constant 1 : i32
    %0 = arith.muli %arg0, %c1_i32 : i32
    %1 = arith.addi %0, %arg1 : i32
    %c0_i32 = arith.constant 0 : i32
    %2 = arith.minsi %1, %c0_i32 : i32
    %c0_i32_0 = arith.constant 0 : i32
    %c0_i32_1 = arith.constant 0 : i32
    return %2, %c0_i32_0 : i32, i32
  }
  func.func @transform_1(%arg0: i32, %arg1: i32) -> (i32, i32) {
    %c1_i32 = arith.constant 1 : i32
    %0 = arith.muli %arg0, %c1_i32 : i32
    %1 = arith.addi %0, %arg1 : i32
    %c0_i32 = arith.constant 0 : i32
    %2 = arith.minsi %1, %c0_i32 : i32
    %c0_i32_0 = arith.constant 0 : i32
    %c0_i32_1 = arith.constant 0 : i32
    return %2, %c0_i32_0 : i32, i32
  }
  func.func @transform_2(%arg0: i32, %arg1: i32) -> (i32, i32, i32) {
    %c0_i32 = arith.constant 0 : i32
    %c0_i32_0 = arith.constant 0 : i32
    %c0_i32_1 = arith.constant 0 : i32
    return %arg0, %c0_i32, %c0_i32_0 : i32, i32, i32
  }
}

</mosaic_0001>

<bundles_post_ra>
// kernel: tpu_custom_call.1
= control target key start
LH: loop header
LB: loop body
LE: loop exit
PB: predicated region body
PF: predicated region fallthrough
CT: control target
= control target key end

     0   :  { %7 = vsyncpa [#allocation4], 0  ;;  %s223_s0 = inlined_call_operand.hbm [shape: f32[16,32], index: 0, kind: input, shape index: {}]   ;;  %s224_s1 = inlined_call_operand.hbm [shape: f32[16,32], index: 1, kind: input, shape index: {}]   ;;  %s225_s2 = inlined_call_operand.hbm [shape: f32[1,8,32], index: 2, kind: output, shape index: {}]  }
   0x1   :  { %8 = vsyncpa [#allocation7], 0 }
   0x2   :  { %9 = vsyncpa [#allocation5], 0  ;;  %s188_s9 = smov [#allocation3]  }
   0x3   :  { %s21_s10 = sshll.u32 %s188_s9, 4  ;;  %s22_s10 = int_to_ptr.vmem [resolvable:$true] %s21_s10 }
   0x4   :  { %s130_s11 = scalar_lea.vmem %s22_s10, 256  ;;  %p135_p1 = scmp.lt.s32.totalorder %s22_s10, %s22_s10 }
   0x5   :  { %p131_p0 = scmp.ne.s32.totalorder %s22_s10, %s130_s11  ;;  %p136_p2 = scmp.lt.s32.totalorder %s130_s11, %s130_s11 }
   0x7   :  { %p137_p3 = por %p136_p2, %p135_p1 }
   0x9   :  { %p138_p4 = pnand %p137_p3, %p131_p0 }
   0xb   :  { %141 = shalt.err (!%p138_p4)
}
   0xc   :  { %s189_s12 = smov 128   ;;  %s190_s13 = smov 8  }
   0xd   :  { %27 = dma.hbm_to_vmem [thread:$0]  %s223_s0, 256, %s22_s10, [#allocation4], %s189_s12, %s189_s12, %s190_s13  }
   0xe   :  { %s191_s16 = smov [#allocation6]  }
   0xf   :  { %s39_s17 = sshll.u32 %s191_s16, 4  ;;  %s40_s17 = int_to_ptr.vmem [resolvable:$true] %s39_s17 }
  0x10   :  { %s150_s18 = scalar_lea.vmem %s40_s17, 256  ;;  %p155_p6 = scmp.lt.s32.totalorder %s40_s17, %s40_s17 }
  0x11   :  { %p151_p5 = scmp.ne.s32.totalorder %s40_s17, %s150_s18  ;;  %p156_p7 = scmp.lt.s32.totalorder %s150_s18, %s150_s18 }
  0x13   :  { %p157_p8 = por %p156_p7, %p155_p6 }
  0x15   :  { %p158_p9 = pnand %p157_p8, %p151_p5 }
  0x17   :  { %161 = shalt.err (!%p158_p9)
}
  0x18   :  { %45 = dma.hbm_to_vmem [thread:$0]  %s224_s1, 256, %s40_s17, [#allocation7], %s189_s12, %s189_s12, %s190_s13  }
  0x19   :  { %182 = dma.done.wait [#allocation4], 256  }
  0x1a   :  { %183 = vsyncadd [#allocation4], 4294967040 }
  0x1b   :  { %184 = dma.done.wait [#allocation7], 256  }
  0x1c   :  { %185 = vsyncadd [#allocation7], 4294967040  ;;  %vm64_vm0 = vcmask 261120   ;;  %v192_v0 = vmov 0.0   ;;  %v66_v1 = vld [vmem:[#allocation3] sm:$0xff]  ;;  %v67_v2 = vld [vmem:[#allocation3 + $0x8] sm:$0xff] }
  0x1d   :  { %65 = vst.msk [vmem:[#allocation2] sm:$0xff] %vm64_vm0, %v192_v0  ;;  %v68_v3 = vmax.f32 %v66_v1, 1e-08  ;;  %v69_v4 = vmax.f32 %v67_v2, 1e-08  ;;  %v72_v8 = vld [vmem:[#allocation6] sm:$0xff] }
  0x1e   :  { %v73_v10 = vld [vmem:[#allocation6 + $0x8] sm:$0xff]  ;;  %s193_s0 = smov [#allocation8]  }
  0x1f   :  { %v70_v5 = vmin.f32 %v68_v3, 1.0  ;;  %v71_v6 = vmin.f32 %v69_v4, 1.0  ;;  %s98_s1 = sshll.u32 %s193_s0, 4  ;;  %s99_s1 = int_to_ptr.vmem [resolvable:$true] %s98_s1 }
  0x20   :  { %s162_s21 = scalar_lea.vmem %s99_s1, 128  ;;  %p167_p11 = scmp.lt.s32.totalorder %s99_s1, %s99_s1 }
  0x21   :  { %118 = vlog2.f32 %v70_v5  ;;  %p163_p10 = scmp.ne.s32.totalorder %s99_s1, %s162_s21  ;;  %p168_p12 = scmp.lt.s32.totalorder %s162_s21, %s162_s21 }
  0x22   :  { %120 = vlog2.f32 %v71_v6 }
  0x23   :  { %p169_p13 = por %p168_p12, %p167_p11 }
  0x24   :  { %v80_v16 = vld [vmem:[#allocation2] sm:$0xff] }
  0x25   :  { %p170_p0 = pnand %p169_p13, %p163_p10 }
  0x2e   :  { %v119_v7 = vpop.eup %118 }
  0x2f   :  { %v121_v9 = vpop.eup %120  ;;  %v75_v11 = vmul.f32 0.6931472, %v119_v7 }
  0x30   :  { %v77_v12 = vmul.f32 0.6931472, %v121_v9 }
  0x31   :  { %v78_v13 = vmul.f32 %v75_v11, %v72_v8 }
  0x32   :  { %v79_v14 = vmul.f32 %v77_v12, %v73_v10 }
  0x33   :  { %v82_v15 = vsel %vm64_vm0, %v78_v13, 0.0 }
  0x34   :  { %v83_v17 = vsel %vm64_vm0, %v79_v14, 0.0 }
  0x35   :  { %v84_v18 = vadd.f32 %v83_v17, %v82_v15 }
  0x37   :  { %v85_v19 = vadd.f32 %v84_v18, %v80_v16 }
  0x39   :  { %86 = vst.msk [vmem:[#allocation2] sm:$0xff] %vm64_vm0, %v85_v19 }
  0x40   :  { %v90_v20 = vld [vmem:[#allocation2] sm:$0xff] }
  0x41   :  { %91 = vst.msk [vmem:[#allocation8] sm:$0xff] %vm64_vm0, %v90_v20 }
  0x42   :  { %173 = shalt.err (!%p170_p0)
}
  0x43   :  { %101 = dma.vmem_to_hbm [thread:$0]  %s99_s1, 128, %s225_s2, [#allocation5]  }
  0x44   :  { %186 = dma.done.wait [#allocation5], 128  }
  0x45   :  { %187 = vsyncadd [#allocation5], 4294967168 }
  0x46   :  { %105 = vsyncpa [#allocation4], 1 }
  0x47   :  { %106 = vsyncpa [#allocation7], 1 }
  0x48   :  { %107 = vsyncpa [#allocation5], 1 }

</bundles_post_ra>
